<compile_context>
chip_gen: v6e
topology: v6e:2x2x1
jax: 0.10.0
libtpu: 0.0.40
codegen_flags: <defaults>
</compile_context>

<pallas_src>
import jax
import jax.numpy as jnp
from jax.experimental import pallas as pl
from jax.experimental.pallas import tpu as pltpu


def _round_up(n, m):
    return ((n + m - 1) // m) * m


def qvalue_kernel(x_ref, a_ref, w1x_ref, w1a_ref, b1_ref,
                  w2_ref, b2_ref, w3_ref, b3_ref, out_ref):
    # fc1 on concat([x, a], dim=1), computed as two matmuls (no HBM concat).
    h1 = jnp.dot(x_ref[...], w1x_ref[...], preferred_element_type=jnp.float32)
    h1 = h1 + jnp.dot(a_ref[...], w1a_ref[...], preferred_element_type=jnp.float32)
    h1 = jnp.maximum(h1 + b1_ref[...], 0.0)                       # f32 ReLU

    # fc2 + ReLU (cast back to the matmul operand dtype for native MXU rate).
    h2 = jnp.dot(h1.astype(w2_ref.dtype), w2_ref[...],
                 preferred_element_type=jnp.float32)
    h2 = jnp.maximum(h2 + b2_ref[...], 0.0)                       # f32 ReLU

    # fc_out (hidden_dim1 -> 1): VPU multiply + cross-lane reduce instead of a
    # lane-width-1 MXU matmul; bias comes from SMEM.
    q = jnp.sum(h2 * w3_ref[...], axis=-1) + b3_ref[0]            # (TB,)

    # Lane-dense store: batch lives on the lane axis of the output block.
    out_ref[...] = q.reshape(1, -1).astype(out_ref.dtype)


def qvalue_net_continuous(x, a, params, *, block_b=256,
                          compute_dtype=jnp.bfloat16):
    """Pallas forward of QValueNetContinuous. Returns (B, 1) f32 Q-values."""
    w1, b1, w2, b2, w3, b3 = params
    B, state_dim = x.shape
    action_dim = a.shape[1]
    hidden_dim = w1.shape[1]
    hidden_dim1 = w2.shape[1]

    # Split fc1's weight so the feature concat never materializes in HBM.
    w1x = w1[:state_dim]
    w1a = w1[state_dim:]

    # Batch tile: multiple of 8 sublanes; pad B up to a multiple of the tile.
    tb = min(block_b, _round_up(B, 8))
    Bp = _round_up(B, tb)
    if Bp != B:
        pad = Bp - B
        x = jnp.pad(x, ((0, pad), (0, 0)))
        a = jnp.pad(a, ((0, pad), (0, 0)))
    grid = (Bp // tb,)

    cd = jnp.dtype(compute_dtype)
    # MXU operands in compute dtype; biases / final-layer weight stay f32.
    x = x.astype(cd)
    a = a.astype(cd)
    w1x = w1x.astype(cd)
    w1a = w1a.astype(cd)
    w2 = w2.astype(cd)
    b1 = jnp.asarray(b1, jnp.float32).reshape(1, hidden_dim)
    b2 = jnp.asarray(b2, jnp.float32).reshape(1, hidden_dim1)
    w3 = jnp.asarray(w3, jnp.float32).reshape(1, hidden_dim1)
    b3 = jnp.asarray(b3, jnp.float32).reshape(1)                  # SMEM scalar

    feat = state_dim + action_dim
    itemsize = cd.itemsize
    flops = 2 * Bp * (feat * hidden_dim + hidden_dim * hidden_dim1 + hidden_dim1)
    bytes_accessed = (
        Bp * feat * itemsize                                   # activation stream in
        + Bp * 4                                               # q out (f32)
        + (feat * hidden_dim + hidden_dim * hidden_dim1) * itemsize
        + (hidden_dim + hidden_dim1 + hidden_dim1 + 1) * 4     # biases + w3
    )

    out = pl.pallas_call(
        qvalue_kernel,
        out_shape=jax.ShapeDtypeStruct((1, Bp), jnp.float32),
        grid_spec=pltpu.PrefetchScalarGridSpec(
            num_scalar_prefetch=0,
            grid=grid,
            in_specs=[
                pl.BlockSpec((tb, state_dim), lambda i: (i, 0)),    # x tile
                pl.BlockSpec((tb, action_dim), lambda i: (i, 0)),   # a tile
                pl.BlockSpec((state_dim, hidden_dim), lambda i: (0, 0)),   # w1x
                pl.BlockSpec((action_dim, hidden_dim), lambda i: (0, 0)),  # w1a
                pl.BlockSpec((1, hidden_dim), lambda i: (0, 0)),           # b1
                pl.BlockSpec((hidden_dim, hidden_dim1), lambda i: (0, 0)),  # w2
                pl.BlockSpec((1, hidden_dim1), lambda i: (0, 0)),          # b2
                pl.BlockSpec((1, hidden_dim1), lambda i: (0, 0)),          # w3 row
                pl.BlockSpec(memory_space=pltpu.MemorySpace.SMEM),         # b3
            ],
            out_specs=pl.BlockSpec((1, tb), lambda i: (0, i)),
        ),
        compiler_params=pltpu.CompilerParams(
            dimension_semantics=("parallel",)),
        cost_estimate=pl.CostEstimate(
            flops=flops, transcendentals=0, bytes_accessed=bytes_accessed),
    )(x, a, w1x, w1a, b1, w2, b2, w3, b3)

    return out[0, :B].reshape(B, 1)


def init_params(key, state_dim, hidden_dim, hidden_dim1, action_dim):
    """Deterministic synthetic parameters (PyTorch-Linear-like uniform init)."""
    def linear(k, fan_in, fan_out):
        kw, kb = jax.random.split(k)
        bound = 1.0 / jnp.sqrt(fan_in)
        # stored as (in, out) so the kernel computes x @ W
        w = jax.random.uniform(kw, (fan_in, fan_out), jnp.float32, -bound, bound)
        b = jax.random.uniform(kb, (1, fan_out), jnp.float32, -bound, bound)
        return w, b

    k1, k2, k3 = jax.random.split(key, 3)
    w1, b1 = linear(k1, state_dim + action_dim, hidden_dim)
    w2, b2 = linear(k2, hidden_dim, hidden_dim1)
    w3, b3 = linear(k3, hidden_dim1, 1)
    return (w1, b1, w2, b2, w3, b3)


def reference_forward(x, a, params):
    w1, b1, w2, b2, w3, b3 = params
    cat = jnp.concatenate([x, a], axis=1)
    h1 = jnp.maximum(cat @ w1 + b1, 0.0)
    h2 = jnp.maximum(h1 @ w2 + b2, 0.0)
    return h2 @ w3 + b3


if __name__ == "__main__":
    # Small shapes consistent with the module's forward.
    batch = 256
    state_dim = 16
    action_dim = 8
    hidden_dim = 32
    hidden_dim1 = 32

    key = jax.random.PRNGKey(0)
    kx, ka, kp = jax.random.split(key, 3)
    x = jax.random.normal(kx, (batch, state_dim), jnp.float32)
    a = jax.random.normal(ka, (batch, action_dim), jnp.float32)
    params = init_params(kp, state_dim, hidden_dim, hidden_dim1, action_dim)

    q_ref = reference_forward(x, a, params)

    # 1) f32 compute path, tiled grid of 2 batch blocks: exact vs reference.
    q_f32 = qvalue_net_continuous(x, a, params, block_b=128,
                                  compute_dtype=jnp.float32)
    q_f32 = jax.block_until_ready(q_f32)
    assert q_f32.shape == (batch, 1)
    assert jnp.allclose(q_f32, q_ref, atol=1e-5, rtol=1e-5), "f32 mismatch"

    # 2) default bf16 MXU operands (f32 accumulation): looser tolerance.
    q_bf16 = qvalue_net_continuous(x, a, params, block_b=128)
    q_bf16 = jax.block_until_ready(q_bf16)
    assert jnp.allclose(q_bf16, q_ref, atol=3e-2, rtol=3e-2), "bf16 mismatch"

    # 3) ragged batch (exercises padding path, single block).
    q_small = qvalue_net_continuous(x[:37], a[:37], params,
                                    compute_dtype=jnp.float32)
    q_small = jax.block_until_ready(q_small)
    assert q_small.shape == (37, 1)
    assert jnp.allclose(q_small, q_ref[:37], atol=1e-5, rtol=1e-5), "pad mismatch"

    print("KERNEL_OK")
</pallas_src>

<mosaic_0001>
module attributes {stable_mosaic.version = 11 : i64} {
  func.func @qvalue_kernel(%arg0: i32, %arg1: memref<128x16xf32, #tpu.memory_space<vmem>>, %arg2: memref<128x8xf32, #tpu.memory_space<vmem>>, %arg3: memref<16x32xf32, #tpu.memory_space<vmem>>, %arg4: memref<8x32xf32, #tpu.memory_space<vmem>>, %arg5: memref<1x32xf32, #tpu.memory_space<vmem>>, %arg6: memref<32x32xf32, #tpu.memory_space<vmem>>, %arg7: memref<1x32xf32, #tpu.memory_space<vmem>>, %arg8: memref<1x32xf32, #tpu.memory_space<vmem>>, %arg9: memref<1xf32, #tpu.memory_space<smem>>, %arg10: memref<1x128xf32, #tpu.memory_space<vmem>>) attributes {dimension_semantics = [#tpu.dimension_semantics<parallel>], iteration_bounds = array<i64: 2>, scalar_prefetch = 0 : i64, scratch_operands = 0 : i64, tpu.core_type = #tpu.core_type<tc>, window_params = [{transform_indices = @transform_0, window_bounds = array<i64: 128, 16>}, {transform_indices = @transform_1, window_bounds = array<i64: 128, 8>}, {pipeline_mode = #tpu.pipeline_mode<synchronous>, transform_indices = @transform_2, window_bounds = array<i64: 16, 32>}, {pipeline_mode = #tpu.pipeline_mode<synchronous>, transform_indices = @transform_3, window_bounds = array<i64: 8, 32>}, {pipeline_mode = #tpu.pipeline_mode<synchronous>, transform_indices = @transform_4, window_bounds = array<i64: 1, 32>}, {pipeline_mode = #tpu.pipeline_mode<synchronous>, transform_indices = @transform_5, window_bounds = array<i64: 32, 32>}, {pipeline_mode = #tpu.pipeline_mode<synchronous>, transform_indices = @transform_6, window_bounds = array<i64: 1, 32>}, {pipeline_mode = #tpu.pipeline_mode<synchronous>, transform_indices = @transform_7, window_bounds = array<i64: 1, 32>}, {transform_indices = @transform_8, window_bounds = array<i64: 1>}, {transform_indices = @transform_9, window_bounds = array<i64: 1, 128>}]} {
    %c0 = arith.constant 0 : index
    %c0_0 = arith.constant 0 : index
    %0 = vector.load %arg1[%c0, %c0_0] : memref<128x16xf32, #tpu.memory_space<vmem>>, vector<128x16xf32>
    %c0_1 = arith.constant 0 : index
    %c0_2 = arith.constant 0 : index
    %1 = vector.load %arg3[%c0_1, %c0_2] : memref<16x32xf32, #tpu.memory_space<vmem>>, vector<16x32xf32>
    %cst = arith.constant dense<0.000000e+00> : vector<128x32xf32>
    %2 = tpu.matmul %0, %1, %cst {dimension_numbers = #tpu.dot_dimension_numbers<[1], [0], [0], [1], [0, 0, 1, 1], [], []>} : vector<128x16xf32>, vector<16x32xf32>, vector<128x32xf32> -> vector<128x32xf32>
    %c0_3 = arith.constant 0 : index
    %c0_4 = arith.constant 0 : index
    %3 = vector.load %arg2[%c0_3, %c0_4] : memref<128x8xf32, #tpu.memory_space<vmem>>, vector<128x8xf32>
    %c0_5 = arith.constant 0 : index
    %c0_6 = arith.constant 0 : index
    %4 = vector.load %arg4[%c0_5, %c0_6] : memref<8x32xf32, #tpu.memory_space<vmem>>, vector<8x32xf32>
    %cst_7 = arith.constant dense<0.000000e+00> : vector<128x32xf32>
    %5 = tpu.matmul %3, %4, %cst_7 {dimension_numbers = #tpu.dot_dimension_numbers<[1], [0], [0], [1], [0, 0, 1, 1], [], []>} : vector<128x8xf32>, vector<8x32xf32>, vector<128x32xf32> -> vector<128x32xf32>
    %6 = arith.addf %2, %5 : vector<128x32xf32>
    %c0_8 = arith.constant 0 : index
    %c0_9 = arith.constant 0 : index
    %7 = vector.load %arg5[%c0_8, %c0_9] : memref<1x32xf32, #tpu.memory_space<vmem>>, vector<1x32xf32>
    %8 = vector.broadcast %7 : vector<1x32xf32> to vector<128x32xf32>
    %9 = arith.addf %6, %8 : vector<128x32xf32>
    %cst_10 = arith.constant 0.000000e+00 : f32
    %10 = vector.broadcast %cst_10 : f32 to vector<128x32xf32>
    %11 = arith.maximumf %9, %10 : vector<128x32xf32>
    %c0_11 = arith.constant 0 : index
    %c0_12 = arith.constant 0 : index
    %12 = vector.load %arg6[%c0_11, %c0_12] : memref<32x32xf32, #tpu.memory_space<vmem>>, vector<32x32xf32>
    %cst_13 = arith.constant dense<0.000000e+00> : vector<128x32xf32>
    %13 = tpu.matmul %11, %12, %cst_13 {dimension_numbers = #tpu.dot_dimension_numbers<[1], [0], [0], [1], [0, 0, 1, 1], [], []>} : vector<128x32xf32>, vector<32x32xf32>, vector<128x32xf32> -> vector<128x32xf32>
    %c0_14 = arith.constant 0 : index
    %c0_15 = arith.constant 0 : index
    %14 = vector.load %arg7[%c0_14, %c0_15] : memref<1x32xf32, #tpu.memory_space<vmem>>, vector<1x32xf32>
    %15 = vector.broadcast %14 : vector<1x32xf32> to vector<128x32xf32>
    %16 = arith.addf %13, %15 : vector<128x32xf32>
    %cst_16 = arith.constant 0.000000e+00 : f32
    %17 = vector.broadcast %cst_16 : f32 to vector<128x32xf32>
    %18 = arith.maximumf %16, %17 : vector<128x32xf32>
    %c0_17 = arith.constant 0 : index
    %c0_18 = arith.constant 0 : index
    %19 = vector.load %arg8[%c0_17, %c0_18] : memref<1x32xf32, #tpu.memory_space<vmem>>, vector<1x32xf32>
    %20 = vector.broadcast %19 : vector<1x32xf32> to vector<128x32xf32>
    %21 = arith.mulf %18, %20 : vector<128x32xf32>
    %cst_19 = arith.constant dense<0.000000e+00> : vector<128xf32>
    %22 = vector.multi_reduction <add>, %21, %cst_19 [1] : vector<128x32xf32> to vector<128xf32>
    %c0_20 = arith.constant 0 : index
    %23 = memref.load %arg9[%c0_20] : memref<1xf32, #tpu.memory_space<smem>>
    %24 = vector.broadcast %23 : f32 to vector<128xf32>
    %25 = arith.addf %22, %24 : vector<128xf32>
    %26 = vector.shape_cast %25 : vector<128xf32> to vector<1x128xf32>
    %c0_21 = arith.constant 0 : index
    %c0_22 = arith.constant 0 : index
    %27 = vector.load %arg10[%c0_21, %c0_22] : memref<1x128xf32, #tpu.memory_space<vmem>>, vector<1x128xf32>
    tpu.vector_store %arg10[%c0_21, %c0_22], %26 {strides = array<i32>} : memref<1x128xf32, #tpu.memory_space<vmem>>, vector<1x128xf32>,
    return
  }
  func.func @transform_0(%arg0: i32) -> (i32, i32) {
    %c0_i32 = arith.constant 0 : i32
    %c0_i32_0 = arith.constant 0 : i32
    return %arg0, %c0_i32 : i32, i32
  }
  func.func @transform_1(%arg0: i32) -> (i32, i32) {
    %c0_i32 = arith.constant 0 : i32
    %c0_i32_0 = arith.constant 0 : i32
    return %arg0, %c0_i32 : i32, i32
  }
  func.func @transform_2(%arg0: i32) -> (i32, i32) {
    %c0_i32 = arith.constant 0 : i32
    %c0_i32_0 = arith.constant 0 : i32
    %c0_i32_1 = arith.constant 0 : i32
    return %c0_i32, %c0_i32_0 : i32, i32
  }
  func.func @transform_3(%arg0: i32) -> (i32, i32) {
    %c0_i32 = arith.constant 0 : i32
    %c0_i32_0 = arith.constant 0 : i32
    %c0_i32_1 = arith.constant 0 : i32
    return %c0_i32, %c0_i32_0 : i32, i32
  }
  func.func @transform_4(%arg0: i32) -> (i32, i32) {
    %c0_i32 = arith.constant 0 : i32
    %c0_i32_0 = arith.constant 0 : i32
    %c0_i32_1 = arith.constant 0 : i32
    return %c0_i32, %c0_i32_0 : i32, i32
  }
  func.func @transform_5(%arg0: i32) -> (i32, i32) {
    %c0_i32 = arith.constant 0 : i32
    %c0_i32_0 = arith.constant 0 : i32
    %c0_i32_1 = arith.constant 0 : i32
    return %c0_i32, %c0_i32_0 : i32, i32
  }
  func.func @transform_6(%arg0: i32) -> (i32, i32) {
    %c0_i32 = arith.constant 0 : i32
    %c0_i32_0 = arith.constant 0 : i32
    %c0_i32_1 = arith.constant 0 : i32
    return %c0_i32, %c0_i32_0 : i32, i32
  }
  func.func @transform_7(%arg0: i32) -> (i32, i32) {
    %c0_i32 = arith.constant 0 : i32
    %c0_i32_0 = arith.constant 0 : i32
    %c0_i32_1 = arith.constant 0 : i32
    return %c0_i32, %c0_i32_0 : i32, i32
  }
  func.func @transform_8(%arg0: i32) -> i32 {
    %c0_i32 = arith.constant 0 : i32
    %c0_i32_0 = arith.constant 0 : i32
    return %c0_i32 : i32
  }
  func.func @transform_9(%arg0: i32) -> (i32, i32) {
    %c0_i32 = arith.constant 0 : i32
    %c0_i32_0 = arith.constant 0 : i32
    return %c0_i32, %arg0 : i32, i32
  }
}

</mosaic_0001>

<bundles_post_ra>
// kernel: tpu_custom_call.1
= control target key start
LH: loop header
LB: loop body
LE: loop exit
PB: predicated region body
PF: predicated region fallthrough
CT: control target
= control target key end

     0   :  { %s2047_s0 = inlined_call_operand.vmem [shape: f32[256,16], index: 0, kind: input, shape index: {}]   ;;  %s2048_s1 = inlined_call_operand.vmem [shape: f32[256,8], index: 1, kind: input, shape index: {}]   ;;  %s2049_s2 = inlined_call_operand.vmem [shape: f32[16,32], index: 2, kind: input, shape index: {}]   ;;  %s2050_s3 = inlined_call_operand.vmem [shape: f32[8,32], index: 3, kind: input, shape index: {}]   ;;  %s2051_s4 = inlined_call_operand.vmem [shape: f32[1,32], index: 4, kind: input, shape index: {}]   ;;  %s2052_s5 = inlined_call_operand.vmem [shape: f32[32,32], index: 5, kind: input, shape index: {}]   ;;  %s2053_s6 = inlined_call_operand.vmem [shape: f32[1,32], index: 6, kind: input, shape index: {}]   ;;  %s2054_s7 = inlined_call_operand.vmem [shape: f32[1,32], index: 7, kind: input, shape index: {}]   ;;  %s2055_s8 = inlined_call_operand.<no memory space> [shape: f32[1], index: 8, kind: input, shape index: {}]   ;;  %s2056_s9 = inlined_call_operand.hbm [shape: f32[1,256], index: 9, kind: output, shape index: {}]  }
   0x1   :  { %14 = sst [smem:[#allocation2]] %s2055_s8 }
   0x2   :  { %15 = vsyncpa [#allocation4], 0 }
   0x3   :  { %17 = vsyncpa [#allocation4 + $0x1], 0  ;;  %s1696_s11 = smov 0   ;;  %s1698_s12 = smov 0  }
   0x4   :  { %s1700_s13 = smov 0   ;;  %s1702_s14 = smov 0  }
   0x5 LB: > { %s1335_s8 = sadd.s32 4294967295, %s1640_s14   ;;  %s1336_s15 = sadd.s32 4294967294, %s1640_s14   ;;  %s1640_s14 = sphi %s1702_s14, %s2062_s14   ;;  %s1636_s13 = sphi %s1700_s13, %s2061_s13   ;;  %s1632_s12 = sphi %s1698_s12, %s2060_s12   ;;  %s1628_s11 = sphi %s1696_s11, %s2059_s11  }
   0x6   : > { %s1719_s16 = sadd.s32 1, %s1640_s14   ;;  %s229_s17 = sadd.s32 1, %s1636_s13 }
   0x7   : > { %s226_s18 = ssub.s32 %s1640_s14, %s1719_s16  ;;  %p239_p0 = scmp.ne.s32.totalorder %s1636_s13, %s1632_s12 }
   0x8   : > { %p227_p1 = scmp.eq.s32.totalorder %s226_s18, 0  ;;  %p240_p2 = scmp.eq.s32.totalorder %s1335_s8, 1 }
   0x9   : > { %p245_p3 = scmp.ne.s32.totalorder %s1632_s12, %s1628_s11  ;;  %p246_p4 = scmp.eq.s32.totalorder %s1336_s15, 1 }
   0xa   : > { %s1729_s19 = scalar_select %p227_p1, %s1636_s13, %s229_s17  }
   0xb   : > { %p1731_p5 = por %p240_p2, %p239_p0  ;;  %p1735_p6 = por %p246_p4, %p245_p3 }
   0xc   : > { %p1339_p7 = scmp.ge.s32.totalorder %s1640_s14, 1  ;;  %p303_p8 = scmp.lt.s32.totalorder %s1640_s14, 3 }
   0xe   : > { %p304_p9 = pnand %p1339_p7, %p303_p8 }
   0xf   : > { %s1744_s24 = sshll.u32 (!%p304_p9), %s1335_s8, 4  ;;  %s1109_s25 = sld [smem:[#allocation2]] (!%p304_p9) }
  0x10   : > { %307 = sbr.rel (%p304_p9) target bundleno = 633 (0x279), region = 56  ;;  %p344_p10 = scmp.lt.s32.totalorder (!%p304_p9), %s1744_s24, 31 }
  0x11   : > { %s341_s26 = sand.u32 (!%p304_p9), 1, %s1632_s12   ;;  %s1642_s17 = smov (!%p304_p9), [#allocation3]  }
  0x12   : > { %s1257_s8 = scalar_lea.sflag (!%p304_p9), [#allocation4], %s341_s26  ;;  %s1584_s18 = sshll.u32 (!%p304_p9), %s1642_s17, 4  ;;  %s1585_s18 = int_to_ptr.vmem [resolvable:$false] %s1584_s18 }
  0x15   : > { %v389_v0 = vld [vmem:[%s2050_s3] sm:$0xff]  ;;  %v372_v1 = vld [vmem:[%s2049_s2 + $0x8] sm:$0xff]  ;;  %s1751_s27 = scalar_select %p344_p10, %s1744_s24, 31  ;;  %vm390_vm0 = vcmask 64512   ;;  %vm584_vm1 = vcmask 130048   ;;  %v820_v35 = vld [vmem:[%s2052_s5 + $0x18] sm:$0xff] }
  0x16   : > { %1539 = vmatprep.subr.mxu1 %v389_v0  ;;  %1453 = vmatprep.subr.mxu0 %v389_v0  ;;  %v371_v5 = vld [vmem:[%s2049_s2] sm:$0xff]  ;;  %v819_v36 = vld [vmem:[%s2052_s5 + $0x10] sm:$0xff]  ;;  %v818_v37 = vld [vmem:[%s2052_s5 + $0x8] sm:$0xff]  ;;  %vm828_vm2 = vcmask 261120   ;;  %vm1154_vm3 = vcmask 130112   ;;  %vm1161_vm4 = vcmask 195712  }
  0x17   : > { %1540 = vmatpush3.msra.mxu1 %v389_v0  ;;  %1454 = vmatpush3.msra.mxu0 %v389_v0  ;;  %s1341_s28 = sshll.u32 %s1751_s27, 3  ;;  %v817_v38 = vld [vmem:[%s2052_s5] sm:$0xff]  ;;  %vm1168_vm5 = vcmask 261312   ;;  %vm1175_vm6 = vcmask 326912   ;;  %vm1182_vm7 = vcmask 392512   ;;  %vm1189_vm8 = vcmask 458112  }
  0x18   : > { %1479 = vmatprep.subr.mxu1 %v372_v1  ;;  %s1757_s10 = scalar_lea.vmem %s2048_s1, %s1341_s28  ;;  %s1785_s22 = scalar_lea.vmem %s2047_s0, %s1341_s28  ;;  %1507 = vmatprep.subr.mxu0 %v820_v35  ;;  %v1856_v54 = vld [vmem:[%s2051_s4] ss:$0 sm:$0xff]  ;;  %vm1196_vm9 = vcmask 523712   ;;  %vm1203_vm10 = vcmask 589312   ;;  %vm1210_vm11 = vcmask 654912   ;;  %vm1217_vm12 = vcmask 720512  }
  0x19   : > { %v381_v2 = vld [vmem:[%s1757_s10 + $0x40] sm:$0xff]  ;;  %v382_v3 = vld [vmem:[%s1757_s10 + $0x48] sm:$0xff]  ;;  %v383_v4 = vld [vmem:[%s1757_s10 + $0x50] sm:$0xff]  ;;  %vm1224_vm13 = vcmask 786112   ;;  %vm1231_vm14 = vcmask 851712   ;;  %vm1238_vm15 = vcmask 917312  }
  0x1a   : > { %1467 = vmatprep.mubr.msk.f32.mxu1 %vm390_vm0, %v381_v2  ;;  %v373_v6 = vld [vmem:[%s1757_s10] sm:$0xff]  ;;  %v384_v7 = vld [vmem:[%s1757_s10 + $0x58] sm:$0xff]  ;;  %v374_v8 = vld [vmem:[%s1757_s10 + $0x8] sm:$0xff]  ;;  %s342_s27 = scalar_lea.vmem [#allocation3], %s341_s26 }
  0x1b   : > { %1468 = vmatmul.mubr.msk.f32.vlgmr.msra.gmra.mxu1 %vm390_vm0, %v382_v3  ;;  %v385_v9 = vld [vmem:[%s1757_s10 + $0x60] sm:$0xff]  ;;  %1455 = vmatprep.mubr.msk.f32.mxu0 %vm390_vm0, %v373_v6  ;;  %v375_v10 = vld [vmem:[%s1757_s10 + $0x10] sm:$0xff]  ;;  %v376_v11 = vld [vmem:[%s1757_s10 + $0x18] sm:$0xff]  ;;  %s1269_s28 = sshll.u32 %s342_s27, 4  ;;  %s1270_s28 = int_to_ptr.vmem [resolvable:$true] %s1269_s28 }
  0x1c   : > { %1480 = vmatpush3.msra.mxu1 %v372_v1  ;;  %1470 = vmatprep.mubr.msk.f32.mxu1 %vm390_vm0, %v383_v4  ;;  %v386_v12 = vld [vmem:[%s1757_s10 + $0x68] sm:$0xff]  ;;  %v377_v13 = vld [vmem:[%s1757_s10 + $0x20] sm:$0xff]  ;;  %v387_v14 = vld [vmem:[%s1757_s10 + $0x70] sm:$0xff]  ;;  %s1580_s15 = scalar_lea.vmem %s1270_s28, 16  ;;  %p1587_p0 = scmp.lt.s32.totalorder %s1270_s28, %s1585_s18 }
  0x1d   : > { %1481 = vmatprep.subr.mxu1 %v371_v5  ;;  %1456 = vmatmul.mubr.msk.f32.vlgmr.msra.gmra.mxu0 %vm390_vm0, %v374_v8  ;;  %v378_v15 = vld [vmem:[%s1757_s10 + $0x28] sm:$0xff]  ;;  %v388_v16 = vld [vmem:[%s1757_s10 + $0x78] sm:$0xff]  ;;  %v379_v17 = vld [vmem:[%s1757_s10 + $0x30] sm:$0xff]  ;;  %p1581_p11 = scmp.ne.s32.totalorder %s1270_s28, %s1580_s15 }
  0x1e   : > { %1482 = vmatpush3.msra.mxu1 %v371_v5  ;;  %1458 = vmatprep.mubr.msk.f32.mxu0 %vm390_vm0, %v375_v10  ;;  %v355_v18 = vld [vmem:[%s1785_s22] sm:$0xff]  ;;  %v380_v19 = vld [vmem:[%s1757_s10 + $0x38] sm:$0xff]  ;;  %v356_v20 = vld [vmem:[%s1785_s22 + $0x8] sm:$0xff]  ;;  %s2012_s10 = scalar_lea.hbm %s2056_s9, %s1744_s24 }
  0x1f   : > { %1471 = vmatmul.mubr.msk.f32.gmra.mxu1 %vm390_vm0, %v384_v7  ;;  %v357_v21 = vld [vmem:[%s1785_s22 + $0x10] sm:$0xff]  ;;  %v358_v22 = vld [vmem:[%s1785_s22 + $0x18] sm:$0xff]  ;;  %v359_v23 = vld [vmem:[%s1785_s22 + $0x20] sm:$0xff]  ;;  %1508 = vmatpush3.msra.mxu0 %v820_v35  ;;  %p1582_p12 = pnand %p1581_p11, %p1731_p5 }
  0x20   : > { %1473 = vmatprep.mubr.msk.f32.mxu1 %vm390_vm0, %v385_v9  ;;  %v360_v24 = vld [vmem:[%s1785_s22 + $0x28] sm:$0xff]  ;;  %v361_v25 = vld [vmem:[%s1785_s22 + $0x30] sm:$0xff]  ;;  %v362_v26 = vld [vmem:[%s1785_s22 + $0x38] sm:$0xff]  ;;  %1509 = vmatprep.subr.mxu0 %v819_v36 }
  0x21   : > { %1459 = vmatmul.mubr.msk.f32.gmra.mxu0 %vm390_vm0, %v376_v11  ;;  %v363_v27 = vld [vmem:[%s1785_s22 + $0x40] sm:$0xff]  ;;  %v364_v28 = vld [vmem:[%s1785_s22 + $0x48] sm:$0xff]  ;;  %v365_v29 = vld [vmem:[%s1785_s22 + $0x50] sm:$0xff]  ;;  %p1583_p13 = pneg %p1582_p12 }
  0x22   : > { %1461 = vmatprep.mubr.msk.f32.mxu0 %vm390_vm0, %v377_v13  ;;  %v366_v30 = vld [vmem:[%s1785_s22 + $0x58] sm:$0xff]  ;;  %v367_v31 = vld [vmem:[%s1785_s22 + $0x60] sm:$0xff]  ;;  %v368_v32 = vld [vmem:[%s1785_s22 + $0x68] sm:$0xff]  ;;  %1510 = vmatpush3.msra.mxu0 %v819_v36 }
  0x23   : > { %1474 = vmatmul.mubr.msk.f32.gmra.mxu1 %vm390_vm0, %v386_v12  ;;  %v369_v33 = vld [vmem:[%s1785_s22 + $0x70] sm:$0xff]  ;;  %v370_v34 = vld [vmem:[%s1785_s22 + $0x78] sm:$0xff]  ;;  %1511 = vmatprep.subr.mxu0 %v818_v37  ;;  %s1586_s22 = scalar_lea.vmem %s1585_s18, 32 }
  0x24   : > { %1476 = vmatprep.mubr.msk.f32.mxu1 %vm390_vm0, %v387_v14  ;;  %1512 = vmatpush3.msra.mxu0 %v818_v37  ;;  %p1588_p1 = scmp.lt.s32.totalorder %s1586_s22, %s1580_s15 }
  0x25   : > { %1462 = vmatmul.mubr.msk.f32.gmra.mxu0 %vm390_vm0, %v378_v15  ;;  %1513 = vmatprep.subr.mxu0 %v817_v38 }
  0x26   : > { %1464 = vmatprep.mubr.msk.f32.mxu0 %vm390_vm0, %v379_v17  ;;  %1514 = vmatpush3.msra.mxu0 %v817_v38  ;;  %p1589_p2 = por %p1588_p1, %p1587_p0 }
  0x27   : > { %1477 = vmatmul.mubr.msk.f32.gmra.mxu1 %vm390_vm0, %v388_v16 }
  0x28   : > { %1483 = vmatprep.mubr.msk.f32.mxu1 %vm584_vm1, %v355_v18  ;;  %p1590_p3 = pnand %p1589_p2, %p1583_p13 }
  0x29   : > { %1465 = vmatmul.mubr.msk.f32.gmra.mxu0 %vm390_vm0, %v380_v19  ;;  %vm1245_vm0 = vcmask 982912  }
  0x2b   : > { %1484 = vmatmul.mubr.msk.f32.vlgmr.msra.gmra.mxu1 %vm584_vm1, %v356_v20 }
  0x2c   : > { %1486 = vmatprep.mubr.msk.f32.mxu1 %vm584_vm1, %v357_v21 }
  0x2f   : > { %1487 = vmatmul.mubr.msk.f32.gmra.mxu1 %vm584_vm1, %v358_v22 }
  0x30   : > { %1489 = vmatprep.mubr.msk.f32.mxu1 %vm584_vm1, %v359_v23 }
  0x33   : > { %1490 = vmatmul.mubr.msk.f32.gmra.mxu1 %vm584_vm1, %v360_v24 }
  0x34   : > { %1492 = vmatprep.mubr.msk.f32.mxu1 %vm584_vm1, %v361_v25 }
  0x37   : > { %1493 = vmatmul.mubr.msk.f32.gmra.mxu1 %vm584_vm1, %v362_v26 }
  0x38   : > { %1495 = vmatprep.mubr.msk.f32.mxu1 %vm584_vm1, %v363_v27 }
  0x3b   : > { %1496 = vmatmul.mubr.msk.f32.gmra.mxu1 %vm584_vm1, %v364_v28 }
  0x3c   : > { %1498 = vmatprep.mubr.msk.f32.mxu1 %vm584_vm1, %v365_v29 }
  0x3f   : > { %1499 = vmatmul.mubr.msk.f32.gmra.mxu1 %vm584_vm1, %v366_v30 }
  0x40   : > { %1501 = vmatprep.mubr.msk.f32.mxu1 %vm584_vm1, %v367_v31 }
  0x43   : > { %1502 = vmatmul.mubr.msk.f32.gmra.mxu1 %vm584_vm1, %v368_v32 }
  0x44   : > { %1504 = vmatprep.mubr.msk.f32.mxu1 %vm584_vm1, %v369_v33 }
  0x47   : > { %1505 = vmatmul.mubr.msk.f32.gmra.mxu1 %vm584_vm1, %v370_v34  ;;  %vm1252_vm1 = vcmask 1048512  }
  0xdb   : > { %v1469_v39 = vpop.f32.mrf.mxu1 }
  0xdd   : > { %v545_v40 = vpop.f32.mrf.mxu1  ;;  %v1457_v41 = vpop.f32.mrf.mxu0 }
  0xdf   : > { %v1472_v42 = vpop.f32.mrf.mxu1  ;;  %v505_v43 = vpop.f32.mrf.mxu0 }
  0xe1   : > { %v1843_v44 = vpop.f32.mrf.mxu1  ;;  %v1460_v46 = vpop.f32.mrf.mxu0 }
  0xe3   : > { %v1845_v45 = vpop.f32.mrf.mxu1  ;;  %v515_v49 = vpop.f32.mrf.mxu0 }
  0xe5   : > { %v1847_v47 = vpop.f32.mrf.mxu1  ;;  %v1463_v52 = vpop.f32.mrf.mxu0 }
  0xe7   : > { %v1849_v48 = vpop.f32.mrf.mxu1  ;;  %v525_v59 = vpop.f32.mrf.mxu0 }
  0xe9   : > { %v1851_v50 = vpop.f32.mrf.mxu1  ;;  %v1466_v4 = vpop.f32.mrf.mxu0 }
  0xeb   : > { %v1485_v51 = vpop.f32.mrf.mxu1  ;;  %v535_v13 = vpop.f32.mrf.mxu0 }
  0xec   : > { %v705_v53 = vadd.f32 %v1485_v51, %v1457_v41 }
  0xed   : > { %v699_v55 = vpop.f32.mrf.mxu1 }
  0xee   : > { %v700_v56 = vadd.f32 %v699_v55, %v505_v43  ;;  %v786_v57 = vadd.f32 %v1856_v54, %v705_v53 }
  0xef   : > { %v1488_v58 = vpop.f32.mrf.mxu1 }
  0xf0   : > { %v785_v60 = vadd.f32 %v1856_v54, %v700_v56  ;;  %v715_v61 = vadd.f32 %v1488_v58, %v1460_v46  ;;  %v802_v1 = vmax.f32 %v786_v57, 0.0 }
  0xf1   : > { %v709_v62 = vpop.f32.mrf.mxu1 }
  0xf2   : > { %v801_v63 = vmax.f32 %v785_v60, 0.0  ;;  %v710_v0 = vadd.f32 %v709_v62, %v515_v49  ;;  %v788_v2 = vadd.f32 %v1856_v54, %v715_v61 }
  0xf3   : > { %v1491_v3 = vpop.f32.mrf.mxu1 }
  0xf4   : > { %v787_v5 = vadd.f32 %v1856_v54, %v710_v0  ;;  %v725_v6 = vadd.f32 %v1491_v3, %v1463_v52  ;;  %1515 = vmatprep.mubr.msk.f32.mxu0 %vm828_vm2, %v801_v63  ;;  %v804_v10 = vmax.f32 %v788_v2, 0.0 }
  0xf5   : > { %v719_v7 = vpop.f32.mrf.mxu1  ;;  %1516 = vmatmul.mubr.msk.f32.vlgmr.msra.gmra.mxu0 %vm828_vm2, %v802_v1 }
  0xf6   : > { %v803_v8 = vmax.f32 %v787_v5, 0.0  ;;  %v720_v9 = vadd.f32 %v719_v7, %v525_v59  ;;  %v790_v11 = vadd.f32 %v1856_v54, %v725_v6 }
  0xf7   : > { %v1494_v12 = vpop.f32.mrf.mxu1 }
  0xf8   : > { %v789_v14 = vadd.f32 %v1856_v54, %v720_v9  ;;  %v735_v15 = vadd.f32 %v1494_v12, %v1466_v4  ;;  %1518 = vmatprep.mubr.msk.f32.mxu0 %vm828_vm2, %v803_v8  ;;  %v806_v19 = vmax.f32 %v790_v11, 0.0 }
  0xf9   : > { %v729_v16 = vpop.f32.mrf.mxu1  ;;  %1519 = vmatmul.mubr.msk.f32.gmra.mxu0 %vm828_vm2, %v804_v10 }
  0xfa   : > { %v805_v17 = vmax.f32 %v789_v14, 0.0  ;;  %v730_v18 = vadd.f32 %v729_v16, %v535_v13  ;;  %v792_v20 = vadd.f32 %v1856_v54, %v735_v15 }
  0xfb   : > { %v1497_v21 = vpop.f32.mrf.mxu1 }
  0xfc   : > { %v791_v22 = vadd.f32 %v1856_v54, %v730_v18  ;;  %v745_v23 = vadd.f32 %v1497_v21, %v1469_v39  ;;  %1521 = vmatprep.mubr.msk.f32.mxu0 %vm828_vm2, %v805_v17  ;;  %v808_v27 = vmax.f32 %v792_v20, 0.0 }
  0xfd   : > { %v739_v24 = vpop.f32.mrf.mxu1  ;;  %1522 = vmatmul.mubr.msk.f32.gmra.mxu0 %vm828_vm2, %v806_v19 }
  0xfe   : > { %v807_v25 = vmax.f32 %v791_v22, 0.0  ;;  %v740_v26 = vadd.f32 %v739_v24, %v545_v40  ;;  %v794_v28 = vadd.f32 %v1856_v54, %v745_v23 }
  0xff   : > { %v1500_v29 = vpop.f32.mrf.mxu1 }
 0x100   : > { %v793_v30 = vadd.f32 %v1856_v54, %v740_v26  ;;  %v755_v31 = vadd.f32 %v1500_v29, %v1472_v42  ;;  %1524 = vmatprep.mubr.msk.f32.mxu0 %vm828_vm2, %v807_v25  ;;  %v810_v35 = vmax.f32 %v794_v28, 0.0 }
 0x101   : > { %v749_v32 = vpop.f32.mrf.mxu1  ;;  %1525 = vmatmul.mubr.msk.f32.gmra.mxu0 %vm828_vm2, %v808_v27 }
 0x102   : > { %v809_v33 = vmax.f32 %v793_v30, 0.0  ;;  %v750_v34 = vadd.f32 %v749_v32, %v1843_v44  ;;  %v796_v36 = vadd.f32 %v1856_v54, %v755_v31 }
 0x103   : > { %v1503_v37 = vpop.f32.mrf.mxu1 }
 0x104   : > { %v795_v38 = vadd.f32 %v1856_v54, %v750_v34  ;;  %v765_v39 = vadd.f32 %v1503_v37, %v1845_v45  ;;  %1527 = vmatprep.mubr.msk.f32.mxu0 %vm828_vm2, %v809_v33  ;;  %v812_v43 = vmax.f32 %v796_v36, 0.0 }
 0x105   : > { %v759_v40 = vpop.f32.mrf.mxu1  ;;  %1528 = vmatmul.mubr.msk.f32.gmra.mxu0 %vm828_vm2, %v810_v35 }
 0x106   : > { %v811_v41 = vmax.f32 %v795_v38, 0.0  ;;  %v760_v42 = vadd.f32 %v759_v40, %v1847_v47  ;;  %v798_v46 = vadd.f32 %v1856_v54, %v765_v39 }
 0x107   : > { %v1506_v44 = vpop.f32.mrf.mxu1 }
 0x108   : > { %v797_v49 = vadd.f32 %v1856_v54, %v760_v42  ;;  %v775_v51 = vadd.f32 %v1506_v44, %v1849_v48  ;;  %1530 = vmatprep.mubr.msk.f32.mxu0 %vm828_vm2, %v811_v41  ;;  %v814_v55 = vmax.f32 %v798_v46, 0.0  ;;  %v1898_v48 = vld [vmem:[%s2053_s6] ss:$0 sm:$0xff] }
 0x109   : > { %v769_v52 = vpop.f32.mrf.mxu1  ;;  %1531 = vmatmul.mubr.msk.f32.gmra.mxu0 %vm828_vm2, %v812_v43 }
 0x10a   : > { %v813_v45 = vmax.f32 %v797_v49, 0.0  ;;  %v770_v53 = vadd.f32 %v769_v52, %v1851_v50  ;;  %v800_v56 = vadd.f32 %v1856_v54, %v775_v51 }
 0x10c   : > { %v799_v47 = vadd.f32 %v1856_v54, %v770_v53  ;;  %1533 = vmatprep.mubr.msk.f32.mxu0 %vm828_vm2, %v813_v45  ;;  %v816_v58 = vmax.f32 %v800_v56, 0.0  ;;  %v1904_v54 = vld [vmem:[%s2054_s7] ss:$0 sm:$0xff] }
 0x10d   : > { %1534 = vmatmul.mubr.msk.f32.gmra.mxu0 %vm828_vm2, %v814_v55 }
 0x10e   : > { %v815_v57 = vmax.f32 %v799_v47, 0.0 }
 0x110   : > { %1536 = vmatprep.mubr.msk.f32.mxu0 %vm828_vm2, %v815_v57 }
 0x111   : > { %1537 = vmatmul.mubr.msk.f32.gmra.mxu0 %vm828_vm2, %v816_v58 }
 0x1b5   : > { %v1517_v50 = vpop.f32.mrf.mxu0 }
 0x1b6   : > { %v949_v59 = vadd.f32 %v1517_v50, %v1898_v48 }
 0x1b7   : > { %v943_v60 = vpop.f32.mrf.mxu0 }
 0x1b8   : > { %v1023_v61 = vmax.f32 %v949_v59, 0.0  ;;  %v944_v62 = vadd.f32 %v1898_v48, %v943_v60 }
 0x1b9   : > { %v1520_v63 = vpop.f32.mrf.mxu0 }
 0x1ba   : > { %v1022_v0 = vmax.f32 %v944_v62, 0.0  ;;  %v959_v1 = vadd.f32 %v1520_v63, %v1898_v48  ;;  %v1046_v2 = vmul.f32 %v1904_v54, %v1023_v61 }
 0x1bb   : > { %v953_v3 = vpop.f32.mrf.mxu0 }
 0x1bc   : > { %v1025_v4 = vmax.f32 %v959_v1, 0.0  ;;  %v954_v5 = vadd.f32 %v1898_v48, %v953_v3  ;;  %v1064_v6 = vsel %vm828_vm2, %v1046_v2, 0.0  ;;  %v1045_v7 = vmul.f32 %v1904_v54, %v1022_v0 }
 0x1bd   : > { %1065 = vadd.xlane.f32.xlu0 %v1064_v6  ;;  %v1523_v8 = vpop.f32.mrf.mxu0 }
 0x1be   : > { %v1024_v9 = vmax.f32 %v954_v5, 0.0  ;;  %v969_v10 = vadd.f32 %v1523_v8, %v1898_v48  ;;  %v1048_v11 = vmul.f32 %v1904_v54, %v1025_v4  ;;  %v1061_v13 = vsel %vm828_vm2, %v1045_v7, 0.0 }
 0x1bf   : > { %v963_v12 = vpop.f32.mrf.mxu0 }
 0x1c0   : > { %v1027_v14 = vmax.f32 %v969_v10, 0.0  ;;  %v964_v15 = vadd.f32 %v1898_v48, %v963_v12  ;;  %v1070_v16 = vsel %vm828_vm2, %v1048_v11, 0.0  ;;  %v1047_v17 = vmul.f32 %v1904_v54, %v1024_v9 }
 0x1c1   : > { %1071 = vadd.xlane.f32.xlu1 %v1070_v16  ;;  %v1526_v18 = vpop.f32.mrf.mxu0  ;;  %1062 = vadd.xlane.f32.xlu0 %v1061_v13  ;;  %v1143_v11 = vlaneseq  ;;  %v1958_v16 = vstv %s1109_s25 }
 0x1c2   : > { %v1026_v19 = vmax.f32 %v964_v15, 0.0  ;;  %v979_v20 = vadd.f32 %v1526_v18, %v1898_v48  ;;  %v1067_v22 = vsel %vm828_vm2, %v1047_v17, 0.0  ;;  %v1050_v26 = vmul.f32 %v1904_v54, %v1027_v14 }
 0x1c3   : > { %v973_v21 = vpop.f32.mrf.mxu0  ;;  %v1953_v12 = vand.u32 127, %v1143_v11  ;;  %v1955_v14 = vshrl.u32 %v1143_v11, 7 }
 0x1c4   : > { %v1029_v23 = vmax.f32 %v979_v20, 0.0  ;;  %v974_v24 = vadd.f32 %v1898_v48, %v973_v21  ;;  %v1049_v25 = vmul.f32 %v1904_v54, %v1026_v19  ;;  %v1076_v35 = vsel %vm828_vm2, %v1050_v26, 0.0 }
 0x1c5   : > { %v1529_v27 = vpop.f32.mrf.mxu0  ;;  %1068 = vadd.xlane.f32.xlu1 %v1067_v22  ;;  %v1149_v15 = vadd.s32 4294967288, %v1953_v12  ;;  %v1163_v17 = vadd.s32 4294967272, %v1953_v12  ;;  %v1147_v19 = vsub.s32 %v1953_v12, %v1955_v14  ;;  %v1170_v22 = vadd.s32 4294967264, %v1953_v12 }
 0x1c6   : > { %v1028_v28 = vmax.f32 %v974_v24, 0.0  ;;  %v989_v29 = vadd.f32 %v1529_v27, %v1898_v48  ;;  %v1073_v30 = vsel %vm828_vm2, %v1049_v25, 0.0  ;;  %v1052_v32 = vmul.f32 %v1904_v54, %v1029_v23 }
 0x1c7   : > { %v983_v31 = vpop.f32.mrf.mxu0  ;;  %1074 = vadd.xlane.f32.xlu0 %v1073_v30  ;;  %v1152_v23 = vsub.s32 %v1149_v15, %v1955_v14  ;;  %v1177_v26 = vadd.s32 4294967256, %v1953_v12  ;;  %v1166_v27 = vsub.s32 %v1163_v17, %v1955_v14  ;;  %v1233_v11 = vadd.s32 4294967192, %v1953_v12 }
 0x1c8   : > { %v1031_v33 = vmax.f32 %v989_v29, 0.0  ;;  %v984_v34 = vadd.f32 %v1898_v48, %v983_v31  ;;  %v1051_v36 = vmul.f32 %v1904_v54, %v1028_v28  ;;  %v1082_v42 = vsel %vm828_vm2, %v1052_v32, 0.0 }
 0x1c9   : > { %v1532_v37 = vpop.f32.mrf.mxu0  ;;  %1077 = vadd.xlane.f32.xlu1 %v1076_v35  ;;  %v1173_v32 = vsub.s32 %v1170_v22, %v1955_v14 }
 0x1ca   : > { %v1030_v38 = vmax.f32 %v984_v34, 0.0  ;;  %v999_v39 = vadd.f32 %v1532_v37, %v1898_v48  ;;  %v1079_v40 = vsel %vm828_vm2, %v1051_v36, 0.0  ;;  %v1054_v49 = vmul.f32 %v1904_v54, %v1031_v33 }
 0x1cb   : > { %v993_v41 = vpop.f32.mrf.mxu0  ;;  %1080 = vadd.xlane.f32.xlu0 %v1079_v40  ;;  %v1184_v33 = vadd.s32 4294967248, %v1953_v12 }
 0x1cc   : > { %v1033_v43 = vmax.f32 %v999_v39, 0.0  ;;  %v994_v46 = vadd.f32 %v1898_v48, %v993_v41  ;;  %v1053_v44 = vmul.f32 %v1904_v54, %v1030_v38  ;;  %v1088_v58 = vsel %vm828_vm2, %v1054_v49, 0.0 }
 0x1cd   : > { %v1535_v51 = vpop.f32.mrf.mxu0  ;;  %1083 = vadd.xlane.f32.xlu1 %v1082_v42  ;;  %v1180_v38 = vsub.s32 %v1177_v26, %v1955_v14  ;;  %v1191_v39 = vadd.s32 4294967240, %v1953_v12 }
 0x1ce   : > { %v1032_v52 = vmax.f32 %v994_v46, 0.0  ;;  %v1009_v45 = vadd.f32 %v1535_v51, %v1898_v48  ;;  %v1085_v53 = vsel %vm828_vm2, %v1053_v44, 0.0  ;;  %v1056_v56 = vmul.f32 %v1904_v54, %v1033_v43 }
 0x1cf   : > { %v1003_v55 = vpop.f32.mrf.mxu0  ;;  %1086 = vadd.xlane.f32.xlu0 %v1085_v53  ;;  %v1198_v43 = vadd.s32 4294967232, %v1953_v12  ;;  %v1187_v51 = vsub.s32 %v1184_v33, %v1955_v14  ;;  %v1205_v53 = vadd.s32 4294967224, %v1953_v12 }
 0x1d0   : > { %v1035_v47 = vmax.f32 %v1009_v45, 0.0  ;;  %v1004_v57 = vadd.f32 %v1898_v48, %v1003_v55  ;;  %v1055_v50 = vmul.f32 %v1904_v54, %v1032_v52  ;;  %v1094_v0 = vsel %vm828_vm2, %v1056_v56, 0.0 }
 0x1d1   : > { %v1538_v59 = vpop.f32.mrf.mxu0  ;;  %1089 = vadd.xlane.f32.xlu1 %v1088_v58 }
 0x1d2   : > { %v1034_v60 = vmax.f32 %v1004_v57, 0.0  ;;  %v1019_v61 = vadd.f32 %v1538_v59, %v1898_v48  ;;  %v1091_v62 = vsel %vm828_vm2, %v1055_v50, 0.0  ;;  %v1058_v4 = vmul.f32 %v1904_v54, %v1035_v47 }
 0x1d3   : > { %v1013_v63 = vpop.f32.mrf.mxu0  ;;  %1092 = vadd.xlane.f32.xlu0 %v1091_v62  ;;  %v1194_v57 = vsub.s32 %v1191_v39, %v1955_v14  ;;  %v1201_v50 = vsub.s32 %v1198_v43, %v1955_v14  ;;  %v1212_v62 = vadd.s32 4294967216, %v1953_v12 }
 0x1d4   : > { %v1037_v1 = vmax.f32 %v1019_v61, 0.0  ;;  %v1014_v2 = vadd.f32 %v1898_v48, %v1013_v63  ;;  %v1057_v3 = vmul.f32 %v1904_v54, %v1034_v60  ;;  %v1100_v7 = vsel %vm828_vm2, %v1058_v4, 0.0 }
 0x1d5   : > { %1095 = vadd.xlane.f32.xlu1 %v1094_v0  ;;  %v1208_v0 = vsub.s32 %v1205_v53, %v1955_v14  ;;  %v1219_v4 = vadd.s32 4294967208, %v1953_v12 }
 0x1d6   : > { %v1036_v5 = vmax.f32 %v1014_v2, 0.0  ;;  %v1097_v6 = vsel %vm828_vm2, %v1057_v3, 0.0  ;;  %v1060_v9 = vmul.f32 %v1904_v54, %v1037_v1 }
 0x1d7   : > { %1098 = vadd.xlane.f32.xlu0 %v1097_v6  ;;  %v1226_v6 = vadd.s32 4294967200, %v1953_v12  ;;  %v1222_v17 = vsub.s32 %v1219_v4, %v1955_v14 }
 0x1d8   : > { %v1059_v8 = vmul.f32 %v1904_v54, %v1036_v5  ;;  %v1106_v48 = vsel %vm828_vm2, %v1060_v9, 0.0  ;;  %v1156_v54 = vadd.s32 4294967280, %v1953_v12 }
 0x1d9   : > { %1101 = vadd.xlane.f32.xlu1 %v1100_v7 }
 0x1da   : > { %v1103_v10 = vsel %vm828_vm2, %v1059_v8, 0.0  ;;  %v1159_v25 = vsub.s32 %v1156_v54, %v1955_v14 }
 0x1db   : > { %1104 = vadd.xlane.f32.xlu0 %v1103_v10  ;;  %v1215_v10 = vsub.s32 %v1212_v62, %v1955_v14 }
 0x1dd   : > { %1107 = vadd.xlane.f32.xlu1 %v1106_v48 }
 0x246   : > { %v1066_v13 = vpop.xlane.xlu0 %1065 }
 0x247   : > { %v1112_v24 = vadd.f32 %v1958_v16, %v1066_v13 }
 0x249   : > { %v1153_v34 = vrot.slane %v1112_v24, %v1152_v23  ;;  %v1240_v23 = vadd.s32 4294967184, %v1953_v12 }
 0x24a   : > { %v1072_v18 = vpop.xlane.xlu1 %1071  ;;  %v1063_v20 = vpop.xlane.xlu0 %1062 }
 0x24b   : > { %v1111_v21 = vadd.f32 %v1958_v16, %v1063_v20  ;;  %v1114_v28 = vadd.f32 %v1958_v16, %v1072_v18 }
 0x24d   : > { %v1148_v29 = vrot.slane %v1111_v21, %v1147_v19  ;;  %v1167_v40 = vrot.slane %v1114_v28, %v1166_v27  ;;  %v1229_v19 = vsub.s32 %v1226_v6, %v1955_v14 }
 0x24e   : > { %v1069_v30 = vpop.xlane.xlu1 %1068 }
 0x24f   : > { %v1113_v31 = vadd.f32 %v1958_v16, %v1069_v30  ;;  %v1155_v41 = vsel %vm1154_vm3, %v1153_v34, %v1148_v29  ;;  %v1247_v29 = vadd.s32 4294967176, %v1953_v12  ;;  %v1243_v34 = vsub.s32 %v1240_v23, %v1955_v14 }
 0x250   : > { %v1075_v35 = vpop.xlane.xlu0 %1074 }
 0x251   : > { %v1160_v36 = vrot.slane %v1113_v31, %v1159_v25  ;;  %v1115_v37 = vadd.f32 %v1958_v16, %v1075_v35  ;;  %v1236_v25 = vsub.s32 %v1233_v11, %v1955_v14  ;;  %v1250_v39 = vsub.s32 %v1247_v29, %v1955_v14 }
 0x252   : > { %v1078_v42 = vpop.xlane.xlu1 %1077 }
 0x253   : > { %v1162_v46 = vsel %vm1161_vm4, %v1160_v36, %v1155_v41  ;;  %v1174_v44 = vrot.slane %v1115_v37, %v1173_v32  ;;  %v1116_v49 = vadd.f32 %v1958_v16, %v1078_v42 }
 0x254   : > { %v1169_v52 = vsel %vm1168_vm5, %v1167_v40, %v1162_v46  ;;  %v1081_v45 = vpop.xlane.xlu0 %1080 }
 0x255   : > { %v1176_v55 = vsel %vm1175_vm6, %v1174_v44, %v1169_v52  ;;  %v1181_v56 = vrot.slane %v1116_v49, %v1180_v38  ;;  %v1117_v47 = vadd.f32 %v1958_v16, %v1081_v45 }
 0x256   : > { %v1084_v58 = vpop.xlane.xlu1 %1083 }
 0x257   : > { %v1183_v59 = vsel %vm1182_vm7, %v1181_v56, %v1176_v55  ;;  %v1188_v60 = vrot.slane %v1117_v47, %v1187_v51  ;;  %v1118_v61 = vadd.f32 %v1958_v16, %v1084_v58 }
 0x258   : > { %v1087_v63 = vpop.xlane.xlu0 %1086 }
 0x259   : > { %v1190_v1 = vsel %vm1189_vm8, %v1188_v60, %v1183_v59  ;;  %v1195_v2 = vrot.slane %v1118_v61, %v1194_v57  ;;  %v1119_v3 = vadd.f32 %v1958_v16, %v1087_v63 }
 0x25a   : > { %v1090_v5 = vpop.xlane.xlu1 %1089 }
 0x25b   : > { %v1197_v7 = vsel %vm1196_vm9, %v1195_v2, %v1190_v1  ;;  %v1202_v8 = vrot.slane %v1119_v3, %v1201_v50  ;;  %v1120_v9 = vadd.f32 %v1958_v16, %v1090_v5 }
 0x25c   : > { %v1093_v48 = vpop.xlane.xlu0 %1092 }
 0x25d   : > { %v1204_v13 = vsel %vm1203_vm10, %v1202_v8, %v1197_v7  ;;  %v1209_v15 = vrot.slane %v1120_v9, %v1208_v0  ;;  %v1121_v54 = vadd.f32 %v1958_v16, %v1093_v48 }
 0x25e   : > { %v1096_v18 = vpop.xlane.xlu1 %1095 }
 0x25f   : > { %v1211_v20 = vsel %vm1210_vm11, %v1209_v15, %v1204_v13  ;;  %v1216_v21 = vrot.slane %v1121_v54, %v1215_v10  ;;  %v1122_v22 = vadd.f32 %v1958_v16, %v1096_v18 }
 0x260   : > { %v1099_v24 = vpop.xlane.xlu0 %1098 }
 0x261   : > { %v1218_v26 = vsel %vm1217_vm12, %v1216_v21, %v1211_v20  ;;  %v1223_v27 = vrot.slane %v1122_v22, %v1222_v17  ;;  %v1123_v28 = vadd.f32 %v1958_v16, %v1099_v24 }
 0x262   : > { %v1102_v30 = vpop.xlane.xlu1 %1101 }
 0x263   : > { %v1225_v31 = vsel %vm1224_vm13, %v1223_v27, %v1218_v26  ;;  %v1230_v32 = vrot.slane %v1123_v28, %v1229_v19  ;;  %v1124_v33 = vadd.f32 %v1958_v16, %v1102_v30 }
 0x264   : > { %v1105_v35 = vpop.xlane.xlu0 %1104 }
 0x265   : > { %v1232_v36 = vsel %vm1231_vm14, %v1230_v32, %v1225_v31  ;;  %v1237_v37 = vrot.slane %v1124_v33, %v1236_v25  ;;  %v1125_v38 = vadd.f32 %v1958_v16, %v1105_v35 }
 0x266   : > { %v1108_v40 = vpop.xlane.xlu1 %1107 }
 0x267   : > { %v1239_v12 = vsel %vm1238_vm15, %v1237_v37, %v1232_v36  ;;  %v1244_v41 = vrot.slane %v1125_v38, %v1243_v34  ;;  %v1126_v42 = vadd.f32 %v1958_v16, %v1108_v40 }
 0x269   : > { %v1251_v43 = vrot.slane %v1126_v42, %v1250_v39  ;;  %v1246_v46 = vsel %vm1245_vm0, %v1244_v41, %v1239_v12 }
 0x26b   : > { %v1253_v44 = vsel %vm1252_vm1, %v1251_v43, %v1246_v46 }
 0x26c   : > { %1255 = vst [vmem:[%s342_s27] sm:$0x1] %v1253_v44 }
 0x26d   : > { %1593 = shalt.err (!%p1590_p3)
}
 0x26e   : > { %s1594_s24 = scalar_lea.hbm %s2012_s10, 16  ;;  %s1598_s26 = scalar_lea.hbm %s2056_s9, 32 }
 0x26f   : > { %p1595_p4 = scmp.ne.s32.totalorder %s2012_s10, %s1594_s24  ;;  %p1599_p9 = scmp.lt.s32.totalorder %s2012_s10, %s2056_s9 }
 0x270   : > { %p1600_p10 = scmp.lt.s32.totalorder %s1598_s26, %s1594_s24 }
 0x271   : > { %p1596_p7 = pnand %p1595_p4, %p1731_p5 }
 0x272   : > { %p1601_p11 = por %p1600_p10, %p1599_p9 }
 0x273   : > { %p1597_p8 = pneg %p1596_p7 }
 0x275   : > { %p1602_p12 = pnand %p1601_p11, %p1597_p8 }
 0x277   : > { %1605 = shalt.err (!%p1602_p12)
}
 0x278   : > { %1541 = dma.vmem_to_hbm [thread:$0]  (%p1731_p5), %s1270_s28, 16, %s2012_s10, %s1257_s8  }
 0x279 PF: > { %p1547_p13 = scmp.ge.s32.totalorder %s1640_s14, 2  ;;  %s1281_s30 = sand.u32 1, %s1628_s11  }
 0x27a   : > { %s1282_s15 = scalar_lea.sflag [#allocation4], %s1281_s30 }
 0x27b   : > { %p1544_p0 = pnand %p1547_p13, %p1735_p6 }
 0x27d   : > { %p1545_p1 = pneg %p1544_p0 }
 0x27f   : > { %1623 = dma.done.wait (%p1545_p1), %s1282_s15, 16  }
 0x280   : > { %1625 = vsyncadd (%p1545_p1), %s1282_s15, 4294967280  ;;  %p20_p2 = scmp.ge.s32.totalorder %s1719_s16, 4   ;;  %s2059_s11 = smov %s1632_s12 }
 0x281   : > { %s2060_s12 = smov %s1636_s13  ;;  %s2061_s13 = smov %s1729_s19 }
 0x282   : > { %s2062_s14 = smov %s1719_s16  ;;  %22 = sbr.rel (!%p20_p2) target bundleno = 5 (0x5), region = 94 }
 0x287   :  { %1286 = vsyncpa [#allocation4], 1 }
 0x288   :  { %1288 = vsyncpa [#allocation4 + $0x1], 1 }

</bundles_post_ra>
